<compile_context>
chip_gen: v7x
topology: tpu7x:2x2x1
jax: 0.10.0
libtpu: 0.0.40
codegen_flags: <defaults>
</compile_context>

<pallas_src>
import math

import jax
import jax.numpy as jnp
from jax.experimental import pallas as pl
from jax.experimental.pallas import tpu as pltpu

HIDDEN = 32            # hidden_size / word_embedding_dim
HEADS = 4              # num_attention_heads
HEAD_DIM = HIDDEN // HEADS
QUERY_DIM = 200        # AdditiveAttention(hidden_size, 200)
QUERY_DIM_PAD = 256    # lane-aligned (multiple of 128) padding of the query dim
NEG = -1e30            # finite mask sentinel (keeps softmax NaN-free on all-padding rows)


def _user_encoder_kernel(x_ref, w_in_ref, b_in_ref, b_out_ref,
                         w_add_ref, b_add_ref, qvec_ref, out_ref):
    x = x_ref[...].astype(jnp.float32)                  # (TB, N, D), bf16 -> f32 once
    TB, N, D = x.shape
    H, Hd = HEADS, HEAD_DIM

    # padding_mask = ~news_vectors.sum(dim=2).bool(): all-zero rows are padding
    row_sum = jnp.sum(x, axis=-1)                       # (TB, N)
    neg_mask = jnp.where(row_sum == 0.0, NEG, 0.0)      # additive mask, finite sentinel
    key_mask = neg_mask[:, None, :]                     # (TB, 1, N), broadcasts over queries

    x_flat = x.reshape(TB * N, D)                       # free: N == f32 sublane tile (8)

    # ---- fused in-projection over the whole tile: [Q*scale | K | Vfold(heads)] ----
    # out_proj and 1/sqrt(Hd) are already folded into the weight/bias at trace time.
    qkvf = jnp.dot(x_flat, w_in_ref[...],
                   preferred_element_type=jnp.float32) + b_in_ref[...]   # (TB*N, 6D)

    k_off = D
    v_off = 2 * D
    mha = None
    for h in range(H):                                  # tiny static head loop; batched over TB
        qh = qkvf[:, h * Hd:(h + 1) * Hd].reshape(TB, N, Hd)
        kh = qkvf[:, k_off + h * Hd:k_off + (h + 1) * Hd].reshape(TB, N, Hd)
        vh = qkvf[:, v_off + h * D:v_off + (h + 1) * D].reshape(TB, N, D)   # folded V, 32 lanes
        s = jnp.einsum("bqd,bkd->bqk", qh, kh,
                       preferred_element_type=jnp.float32) + key_mask       # (TB, N, N)
        s = s - jnp.max(s, axis=-1, keepdims=True)
        p = jnp.exp(s)
        p = p * pl.reciprocal(jnp.sum(p, axis=-1, keepdims=True), approx=True)
        o = jnp.einsum("bqk,bkm->bqm", p, vh,
                       preferred_element_type=jnp.float32)                   # (TB, N, D)
        mha = o if mha is None else mha + o
    mha = mha + b_out_ref[...]                          # (TB, N, D)

    # ---- AdditiveAttention(hidden_size, 200), query dim zero-padded to 256 ----
    mha_flat = mha.reshape(TB * N, D)
    temp = jnp.tanh(jnp.dot(mha_flat, w_add_ref[...],
                            preferred_element_type=jnp.float32) + b_add_ref[...])  # (TB*N, Qp)
    sc = jnp.sum(temp.reshape(TB, N, -1) * qvec_ref[...], axis=-1)      # (TB, N)
    sc = sc + neg_mask
    sc = sc - jnp.max(sc, axis=-1, keepdims=True)
    w = jnp.exp(sc)
    w = w * pl.reciprocal(jnp.sum(w, axis=-1, keepdims=True), approx=True)
    user = jnp.sum(w[:, :, None] * mha, axis=1)         # (TB, D) weighted pooling
    out_ref[...] = user.astype(out_ref.dtype)


def user_encoder(x, params, tb=512, vmem_limit_bytes=48 * 1024 * 1024):
    """x: (B, N, D) float32, params in PyTorch layout -> (B, D) float32."""
    B, N, D = x.shape
    H, Hd = HEADS, HEAD_DIM
    w_in, b_in, w_out, b_out, w_add, b_add, qvec = params
    Q = w_add.shape[0]
    QP = max(QUERY_DIM_PAD, pl.cdiv(Q, 128) * 128)

    # ---- trace-time weight folding (free, compiled once) ----
    w_in = jnp.asarray(w_in, jnp.float32)                                 # (3D, D)
    b_in = jnp.asarray(b_in, jnp.float32).reshape(3 * D)
    w_out_t = jnp.asarray(w_out, jnp.float32).T                           # (D, D)
    scale = 1.0 / math.sqrt(Hd)

    wq_t = w_in[0:D, :].T * scale                                         # scale folded into Q
    wk_t = w_in[D:2 * D, :].T
    wv_t = w_in[2 * D:3 * D, :].T
    bq = b_in[0:D] * scale
    bk = b_in[D:2 * D]
    bv = b_in[2 * D:3 * D]

    # out_proj folded per head into the value projection: vf_h = x @ (Wv_h^T Wout_h^T) + bv_h Wout_h^T
    wvf = [wv_t[:, h * Hd:(h + 1) * Hd] @ w_out_t[h * Hd:(h + 1) * Hd, :] for h in range(H)]
    bvf = [bv[h * Hd:(h + 1) * Hd] @ w_out_t[h * Hd:(h + 1) * Hd, :] for h in range(H)]
    w_fused = jnp.concatenate([wq_t, wk_t] + wvf, axis=1)                 # (D, 6D) = (32, 192)
    b_fused = jnp.concatenate([bq, bk] + bvf).reshape(1, 6 * D)

    b_out_r = jnp.asarray(b_out, jnp.float32).reshape(1, D)
    w_add_t = jnp.zeros((D, QP), jnp.float32).at[:, :Q].set(jnp.asarray(w_add, jnp.float32).T)
    b_add_p = jnp.zeros((1, QP), jnp.float32).at[:, :Q].set(jnp.asarray(b_add, jnp.float32).reshape(1, Q))
    qvec_p = jnp.zeros((1, QP), jnp.float32).at[:, :Q].set(jnp.asarray(qvec, jnp.float32).reshape(1, Q))

    # ---- batch tiling: TB=512 amortizes the ~0.35us per-grid-step overhead ----
    TB = min(tb, B)
    B_pad = pl.cdiv(B, TB) * TB
    x_p = x if B_pad == B else jnp.pad(x, ((0, B_pad - B), (0, 0), (0, 0)))
    x_p = x_p.astype(jnp.bfloat16)        # halves HBM traffic / x VMEM; zeros stay exact

    out = pl.pallas_call(
        _user_encoder_kernel,
        out_shape=jax.ShapeDtypeStruct((B_pad, D), jnp.float32),
        grid_spec=pltpu.PrefetchScalarGridSpec(
            num_scalar_prefetch=0,
            grid=(B_pad // TB,),
            in_specs=[
                pl.BlockSpec((TB, N, D), lambda b: (b, 0, 0)),    # news_vectors tile (bf16)
                pl.BlockSpec((D, 6 * D), lambda b: (0, 0)),       # fused [Q*s | K | Vfold] weight
                pl.BlockSpec((1, 6 * D), lambda b: (0, 0)),       # fused in-proj bias
                pl.BlockSpec((1, D), lambda b: (0, 0)),           # out_proj bias
                pl.BlockSpec((D, QP), lambda b: (0, 0)),          # additive weight (pre-T, padded)
                pl.BlockSpec((1, QP), lambda b: (0, 0)),          # additive bias (padded)
                pl.BlockSpec((1, QP), lambda b: (0, 0)),          # additive query vector (padded)
            ],
            out_specs=pl.BlockSpec((TB, D), lambda b: (b, 0)),
        ),
        compiler_params=pltpu.CompilerParams(
            dimension_semantics=("parallel",),                    # batch tiles are independent
            vmem_limit_bytes=vmem_limit_bytes),                   # safe on v5e/v6e/v7x
    )(x_p, w_fused, b_fused, b_out_r, w_add_t, b_add_p, qvec_p)
    return out[:B]


def _reference(x, params):
    """Plain-JAX reference mirroring the PyTorch forward for a sanity check."""
    w_in, b_in, w_out, b_out, w_add, b_add, qvec = params
    B, N, D = x.shape
    pad = jnp.sum(x, axis=-1) == 0.0                          # (B, N) key_padding_mask
    qkv = jnp.einsum("bnd,ed->bne", x, w_in) + b_in[0]
    q, k, v = jnp.split(qkv, 3, axis=-1)

    def split_heads(t):
        return t.reshape(B, N, HEADS, HEAD_DIM).transpose(0, 2, 1, 3)

    qh, kh, vh = split_heads(q), split_heads(k), split_heads(v)
    s = jnp.einsum("bhqd,bhkd->bhqk", qh, kh) / math.sqrt(HEAD_DIM)
    s = s + jnp.where(pad, -jnp.inf, 0.0)[:, None, None, :]
    p = jax.nn.softmax(s, axis=-1)
    o = jnp.einsum("bhqk,bhkd->bhqd", p, vh).transpose(0, 2, 1, 3).reshape(B, N, D)
    mha = jnp.einsum("bnd,ed->bne", o, w_out) + b_out[0]
    temp = jnp.tanh(jnp.einsum("bnd,qd->bnq", mha, w_add) + b_add[0])
    sc = jnp.einsum("bnq,q->bn", temp, qvec[0])
    sc = jnp.where(pad, -jnp.inf, sc)
    w = jax.nn.softmax(sc, axis=-1)
    return jnp.einsum("bn,bnd->bd", w, mha)


if __name__ == "__main__":
    B, N = 2, 8
    key = jax.random.PRNGKey(0)
    keys = jax.random.split(key, 8)

    x = jax.random.normal(keys[0], (B, N, HIDDEN), jnp.float32)
    # make trailing "clicked news" slots padding (all-zero rows) to exercise the mask
    x = x.at[0, 6:].set(0.0)
    x = x.at[1, 7:].set(0.0)

    s = 0.1
    w_in = jax.random.uniform(keys[1], (3 * HIDDEN, HIDDEN), jnp.float32, -s, s)
    b_in = jax.random.uniform(keys[2], (1, 3 * HIDDEN), jnp.float32, -s, s)
    w_out = jax.random.uniform(keys[3], (HIDDEN, HIDDEN), jnp.float32, -s, s)
    b_out = jax.random.uniform(keys[4], (1, HIDDEN), jnp.float32, -s, s)
    w_add = jax.random.uniform(keys[5], (QUERY_DIM, HIDDEN), jnp.float32, -s, s)
    b_add = jax.random.uniform(keys[6], (1, QUERY_DIM), jnp.float32, -s, s)
    qvec = jax.random.uniform(keys[7], (1, QUERY_DIM), jnp.float32, -0.1, 0.1)
    params = (w_in, b_in, w_out, b_out, w_add, b_add, qvec)

    out = user_encoder(x, params)
    jax.block_until_ready(out)

    ref = _reference(x, params)
    assert out.shape == (B, HIDDEN), out.shape
    assert bool(jnp.all(jnp.isfinite(out)))
    assert bool(jnp.allclose(out, ref, rtol=2e-2, atol=2e-2))
    print("KERNEL_OK")
</pallas_src>

<mosaic_0001>
module attributes {stable_mosaic.version = 11 : i64} {
  func.func @_user_encoder_kernel(%arg0: i32, %arg1: memref<2x8x32xbf16, #tpu.memory_space<vmem>>, %arg2: memref<32x192xf32, #tpu.memory_space<vmem>>, %arg3: memref<1x192xf32, #tpu.memory_space<vmem>>, %arg4: memref<1x32xf32, #tpu.memory_space<vmem>>, %arg5: memref<32x256xf32, #tpu.memory_space<vmem>>, %arg6: memref<1x256xf32, #tpu.memory_space<vmem>>, %arg7: memref<1x256xf32, #tpu.memory_space<vmem>>, %arg8: memref<2x32xf32, #tpu.memory_space<vmem>>) attributes {dimension_semantics = [#tpu.dimension_semantics<parallel>], iteration_bounds = array<i64: 1>, scalar_prefetch = 0 : i64, scratch_operands = 0 : i64, tpu.core_type = #tpu.core_type<tc>, window_params = [{transform_indices = @transform_0, window_bounds = array<i64: 2, 8, 32>}, {pipeline_mode = #tpu.pipeline_mode<synchronous>, transform_indices = @transform_1, window_bounds = array<i64: 32, 192>}, {pipeline_mode = #tpu.pipeline_mode<synchronous>, transform_indices = @transform_2, window_bounds = array<i64: 1, 192>}, {pipeline_mode = #tpu.pipeline_mode<synchronous>, transform_indices = @transform_3, window_bounds = array<i64: 1, 32>}, {pipeline_mode = #tpu.pipeline_mode<synchronous>, transform_indices = @transform_4, window_bounds = array<i64: 32, 256>}, {pipeline_mode = #tpu.pipeline_mode<synchronous>, transform_indices = @transform_5, window_bounds = array<i64: 1, 256>}, {pipeline_mode = #tpu.pipeline_mode<synchronous>, transform_indices = @transform_6, window_bounds = array<i64: 1, 256>}, {transform_indices = @transform_7, window_bounds = array<i64: 2, 32>}]} {
    %c0 = arith.constant 0 : index
    %c0_0 = arith.constant 0 : index
    %c0_1 = arith.constant 0 : index
    %0 = vector.load %arg1[%c0, %c0_0, %c0_1] : memref<2x8x32xbf16, #tpu.memory_space<vmem>>, vector<2x8x32xbf16>
    %1 = arith.extf %0 : vector<2x8x32xbf16> to vector<2x8x32xf32>
    %cst = arith.constant dense<0.000000e+00> : vector<2x8xf32>
    %2 = vector.multi_reduction <add>, %1, %cst [2] : vector<2x8x32xf32> to vector<2x8xf32>
    %cst_2 = arith.constant 0.000000e+00 : f32
    %3 = vector.broadcast %cst_2 : f32 to vector<2x8xf32>
    %4 = arith.cmpf oeq, %2, %3 : vector<2x8xf32>
    %cst_3 = arith.constant -1.000000e+30 : f32
    %cst_4 = arith.constant 0.000000e+00 : f32
    %5 = vector.broadcast %cst_3 : f32 to vector<2x8xf32>
    %6 = vector.broadcast %cst_4 : f32 to vector<2x8xf32>
    %7 = arith.select %4, %5, %6 : vector<2x8xi1>, vector<2x8xf32>
    %8 = vector.shape_cast %7 : vector<2x8xf32> to vector<2x1x8xf32>
    %9 = vector.shape_cast %1 : vector<2x8x32xf32> to vector<16x32xf32>
    %c0_5 = arith.constant 0 : index
    %c0_6 = arith.constant 0 : index
    %10 = vector.load %arg2[%c0_5, %c0_6] : memref<32x192xf32, #tpu.memory_space<vmem>>, vector<32x192xf32>
    %cst_7 = arith.constant dense<0.000000e+00> : vector<16x192xf32>
    %11 = tpu.matmul %9, %10, %cst_7 {dimension_numbers = #tpu.dot_dimension_numbers<[1], [0], [0], [1], [0, 0, 1, 1], [], []>} : vector<16x32xf32>, vector<32x192xf32>, vector<16x192xf32> -> vector<16x192xf32>
    %c0_8 = arith.constant 0 : index
    %c0_9 = arith.constant 0 : index
    %12 = vector.load %arg3[%c0_8, %c0_9] : memref<1x192xf32, #tpu.memory_space<vmem>>, vector<1x192xf32>
    %13 = vector.broadcast %12 : vector<1x192xf32> to vector<16x192xf32>
    %14 = arith.addf %11, %13 : vector<16x192xf32>
    %15 = vector.extract_strided_slice %14 {offsets = [0, 0], sizes = [16, 8], strides = [1, 1]} : vector<16x192xf32> to vector<16x8xf32>
    %16 = vector.shape_cast %15 : vector<16x8xf32> to vector<2x8x8xf32>
    %17 = vector.extract_strided_slice %14 {offsets = [0, 32], sizes = [16, 8], strides = [1, 1]} : vector<16x192xf32> to vector<16x8xf32>
    %18 = vector.shape_cast %17 : vector<16x8xf32> to vector<2x8x8xf32>
    %19 = vector.extract_strided_slice %14 {offsets = [0, 64], sizes = [16, 32], strides = [1, 1]} : vector<16x192xf32> to vector<16x32xf32>
    %20 = vector.shape_cast %19 : vector<16x32xf32> to vector<2x8x32xf32>
    "tpu.trace_start"() <{level = 10 : i32, message = "bqd,bkd->bqk"}> : () -> ()
    %cst_10 = arith.constant dense<0.000000e+00> : vector<2x8x8xf32>
    %21 = tpu.matmul %16, %18, %cst_10 {dimension_numbers = #tpu.dot_dimension_numbers<[2], [2], [1], [1], [0, 0, 0, 1, 1, 1], [0], [0]>} : vector<2x8x8xf32>, vector<2x8x8xf32>, vector<2x8x8xf32> -> vector<2x8x8xf32>
    "tpu.trace_stop"() : () -> ()
    %22 = vector.broadcast %8 : vector<2x1x8xf32> to vector<2x8x8xf32>
    %23 = arith.addf %21, %22 : vector<2x8x8xf32>
    %cst_11 = arith.constant dense<0xFF800000> : vector<2x8xf32>
    %24 = vector.multi_reduction <maximumf>, %23, %cst_11 [2] : vector<2x8x8xf32> to vector<2x8xf32>
    %25 = vector.shape_cast %24 : vector<2x8xf32> to vector<2x8x1xf32>
    %26 = vector.broadcast %25 : vector<2x8x1xf32> to vector<2x8x8xf32>
    %27 = arith.subf %23, %26 : vector<2x8x8xf32>
    %28 = math.exp %27 : vector<2x8x8xf32>
    %cst_12 = arith.constant dense<0.000000e+00> : vector<2x8xf32>
    %29 = vector.multi_reduction <add>, %28, %cst_12 [2] : vector<2x8x8xf32> to vector<2x8xf32>
    %30 = vector.shape_cast %29 : vector<2x8xf32> to vector<2x8x1xf32>
    %31 = tpu.reciprocal %30 {approx = true} : vector<2x8x1xf32> -> vector<2x8x1xf32>
    %32 = vector.broadcast %31 : vector<2x8x1xf32> to vector<2x8x8xf32>
    %33 = arith.mulf %28, %32 : vector<2x8x8xf32>
    "tpu.trace_start"() <{level = 10 : i32, message = "bqk,bkm->bqm"}> : () -> ()
    %cst_13 = arith.constant dense<0.000000e+00> : vector<2x8x32xf32>
    %34 = tpu.matmul %33, %20, %cst_13 {dimension_numbers = #tpu.dot_dimension_numbers<[2], [1], [1], [2], [0, 0, 0, 1, 1, 2], [0], [0]>} : vector<2x8x8xf32>, vector<2x8x32xf32>, vector<2x8x32xf32> -> vector<2x8x32xf32>
    "tpu.trace_stop"() : () -> ()
    %35 = vector.extract_strided_slice %14 {offsets = [0, 8], sizes = [16, 8], strides = [1, 1]} : vector<16x192xf32> to vector<16x8xf32>
    %36 = vector.shape_cast %35 : vector<16x8xf32> to vector<2x8x8xf32>
    %37 = vector.extract_strided_slice %14 {offsets = [0, 40], sizes = [16, 8], strides = [1, 1]} : vector<16x192xf32> to vector<16x8xf32>
    %38 = vector.shape_cast %37 : vector<16x8xf32> to vector<2x8x8xf32>
    %39 = vector.extract_strided_slice %14 {offsets = [0, 96], sizes = [16, 32], strides = [1, 1]} : vector<16x192xf32> to vector<16x32xf32>
    %40 = vector.shape_cast %39 : vector<16x32xf32> to vector<2x8x32xf32>
    "tpu.trace_start"() <{level = 10 : i32, message = "bqd,bkd->bqk"}> : () -> ()
    %cst_14 = arith.constant dense<0.000000e+00> : vector<2x8x8xf32>
    %41 = tpu.matmul %36, %38, %cst_14 {dimension_numbers = #tpu.dot_dimension_numbers<[2], [2], [1], [1], [0, 0, 0, 1, 1, 1], [0], [0]>} : vector<2x8x8xf32>, vector<2x8x8xf32>, vector<2x8x8xf32> -> vector<2x8x8xf32>
    "tpu.trace_stop"() : () -> ()
    %42 = vector.broadcast %8 : vector<2x1x8xf32> to vector<2x8x8xf32>
    %43 = arith.addf %41, %42 : vector<2x8x8xf32>
    %cst_15 = arith.constant dense<0xFF800000> : vector<2x8xf32>
    %44 = vector.multi_reduction <maximumf>, %43, %cst_15 [2] : vector<2x8x8xf32> to vector<2x8xf32>
    %45 = vector.shape_cast %44 : vector<2x8xf32> to vector<2x8x1xf32>
    %46 = vector.broadcast %45 : vector<2x8x1xf32> to vector<2x8x8xf32>
    %47 = arith.subf %43, %46 : vector<2x8x8xf32>
    %48 = math.exp %47 : vector<2x8x8xf32>
    %cst_16 = arith.constant dense<0.000000e+00> : vector<2x8xf32>
    %49 = vector.multi_reduction <add>, %48, %cst_16 [2] : vector<2x8x8xf32> to vector<2x8xf32>
    %50 = vector.shape_cast %49 : vector<2x8xf32> to vector<2x8x1xf32>
    %51 = tpu.reciprocal %50 {approx = true} : vector<2x8x1xf32> -> vector<2x8x1xf32>
    %52 = vector.broadcast %51 : vector<2x8x1xf32> to vector<2x8x8xf32>
    %53 = arith.mulf %48, %52 : vector<2x8x8xf32>
    "tpu.trace_start"() <{level = 10 : i32, message = "bqk,bkm->bqm"}> : () -> ()
    %cst_17 = arith.constant dense<0.000000e+00> : vector<2x8x32xf32>
    %54 = tpu.matmul %53, %40, %cst_17 {dimension_numbers = #tpu.dot_dimension_numbers<[2], [1], [1], [2], [0, 0, 0, 1, 1, 2], [0], [0]>} : vector<2x8x8xf32>, vector<2x8x32xf32>, vector<2x8x32xf32> -> vector<2x8x32xf32>
    "tpu.trace_stop"() : () -> ()
    %55 = arith.addf %34, %54 : vector<2x8x32xf32>
    %56 = vector.extract_strided_slice %14 {offsets = [0, 16], sizes = [16, 8], strides = [1, 1]} : vector<16x192xf32> to vector<16x8xf32>
    %57 = vector.shape_cast %56 : vector<16x8xf32> to vector<2x8x8xf32>
    %58 = vector.extract_strided_slice %14 {offsets = [0, 48], sizes = [16, 8], strides = [1, 1]} : vector<16x192xf32> to vector<16x8xf32>
    %59 = vector.shape_cast %58 : vector<16x8xf32> to vector<2x8x8xf32>
    %60 = vector.extract_strided_slice %14 {offsets = [0, 128], sizes = [16, 32], strides = [1, 1]} : vector<16x192xf32> to vector<16x32xf32>
    %61 = vector.shape_cast %60 : vector<16x32xf32> to vector<2x8x32xf32>
    "tpu.trace_start"() <{level = 10 : i32, message = "bqd,bkd->bqk"}> : () -> ()
    %cst_18 = arith.constant dense<0.000000e+00> : vector<2x8x8xf32>
    %62 = tpu.matmul %57, %59, %cst_18 {dimension_numbers = #tpu.dot_dimension_numbers<[2], [2], [1], [1], [0, 0, 0, 1, 1, 1], [0], [0]>} : vector<2x8x8xf32>, vector<2x8x8xf32>, vector<2x8x8xf32> -> vector<2x8x8xf32>
    "tpu.trace_stop"() : () -> ()
    %63 = vector.broadcast %8 : vector<2x1x8xf32> to vector<2x8x8xf32>
    %64 = arith.addf %62, %63 : vector<2x8x8xf32>
    %cst_19 = arith.constant dense<0xFF800000> : vector<2x8xf32>
    %65 = vector.multi_reduction <maximumf>, %64, %cst_19 [2] : vector<2x8x8xf32> to vector<2x8xf32>
    %66 = vector.shape_cast %65 : vector<2x8xf32> to vector<2x8x1xf32>
    %67 = vector.broadcast %66 : vector<2x8x1xf32> to vector<2x8x8xf32>
    %68 = arith.subf %64, %67 : vector<2x8x8xf32>
    %69 = math.exp %68 : vector<2x8x8xf32>
    %cst_20 = arith.constant dense<0.000000e+00> : vector<2x8xf32>
    %70 = vector.multi_reduction <add>, %69, %cst_20 [2] : vector<2x8x8xf32> to vector<2x8xf32>
    %71 = vector.shape_cast %70 : vector<2x8xf32> to vector<2x8x1xf32>
    %72 = tpu.reciprocal %71 {approx = true} : vector<2x8x1xf32> -> vector<2x8x1xf32>
    %73 = vector.broadcast %72 : vector<2x8x1xf32> to vector<2x8x8xf32>
    %74 = arith.mulf %69, %73 : vector<2x8x8xf32>
    "tpu.trace_start"() <{level = 10 : i32, message = "bqk,bkm->bqm"}> : () -> ()
    %cst_21 = arith.constant dense<0.000000e+00> : vector<2x8x32xf32>
    %75 = tpu.matmul %74, %61, %cst_21 {dimension_numbers = #tpu.dot_dimension_numbers<[2], [1], [1], [2], [0, 0, 0, 1, 1, 2], [0], [0]>} : vector<2x8x8xf32>, vector<2x8x32xf32>, vector<2x8x32xf32> -> vector<2x8x32xf32>
    "tpu.trace_stop"() : () -> ()
    %76 = arith.addf %55, %75 : vector<2x8x32xf32>
    %77 = vector.extract_strided_slice %14 {offsets = [0, 24], sizes = [16, 8], strides = [1, 1]} : vector<16x192xf32> to vector<16x8xf32>
    %78 = vector.shape_cast %77 : vector<16x8xf32> to vector<2x8x8xf32>
    %79 = vector.extract_strided_slice %14 {offsets = [0, 56], sizes = [16, 8], strides = [1, 1]} : vector<16x192xf32> to vector<16x8xf32>
    %80 = vector.shape_cast %79 : vector<16x8xf32> to vector<2x8x8xf32>
    %81 = vector.extract_strided_slice %14 {offsets = [0, 160], sizes = [16, 32], strides = [1, 1]} : vector<16x192xf32> to vector<16x32xf32>
    %82 = vector.shape_cast %81 : vector<16x32xf32> to vector<2x8x32xf32>
    "tpu.trace_start"() <{level = 10 : i32, message = "bqd,bkd->bqk"}> : () -> ()
    %cst_22 = arith.constant dense<0.000000e+00> : vector<2x8x8xf32>
    %83 = tpu.matmul %78, %80, %cst_22 {dimension_numbers = #tpu.dot_dimension_numbers<[2], [2], [1], [1], [0, 0, 0, 1, 1, 1], [0], [0]>} : vector<2x8x8xf32>, vector<2x8x8xf32>, vector<2x8x8xf32> -> vector<2x8x8xf32>
    "tpu.trace_stop"() : () -> ()
    %84 = vector.broadcast %8 : vector<2x1x8xf32> to vector<2x8x8xf32>
    %85 = arith.addf %83, %84 : vector<2x8x8xf32>
    %cst_23 = arith.constant dense<0xFF800000> : vector<2x8xf32>
    %86 = vector.multi_reduction <maximumf>, %85, %cst_23 [2] : vector<2x8x8xf32> to vector<2x8xf32>
    %87 = vector.shape_cast %86 : vector<2x8xf32> to vector<2x8x1xf32>
    %88 = vector.broadcast %87 : vector<2x8x1xf32> to vector<2x8x8xf32>
    %89 = arith.subf %85, %88 : vector<2x8x8xf32>
    %90 = math.exp %89 : vector<2x8x8xf32>
    %cst_24 = arith.constant dense<0.000000e+00> : vector<2x8xf32>
    %91 = vector.multi_reduction <add>, %90, %cst_24 [2] : vector<2x8x8xf32> to vector<2x8xf32>
    %92 = vector.shape_cast %91 : vector<2x8xf32> to vector<2x8x1xf32>
    %93 = tpu.reciprocal %92 {approx = true} : vector<2x8x1xf32> -> vector<2x8x1xf32>
    %94 = vector.broadcast %93 : vector<2x8x1xf32> to vector<2x8x8xf32>
    %95 = arith.mulf %90, %94 : vector<2x8x8xf32>
    "tpu.trace_start"() <{level = 10 : i32, message = "bqk,bkm->bqm"}> : () -> ()
    %cst_25 = arith.constant dense<0.000000e+00> : vector<2x8x32xf32>
    %96 = tpu.matmul %95, %82, %cst_25 {dimension_numbers = #tpu.dot_dimension_numbers<[2], [1], [1], [2], [0, 0, 0, 1, 1, 2], [0], [0]>} : vector<2x8x8xf32>, vector<2x8x32xf32>, vector<2x8x32xf32> -> vector<2x8x32xf32>
    "tpu.trace_stop"() : () -> ()
    %97 = arith.addf %76, %96 : vector<2x8x32xf32>
    %c0_26 = arith.constant 0 : index
    %c0_27 = arith.constant 0 : index
    %98 = vector.load %arg4[%c0_26, %c0_27] : memref<1x32xf32, #tpu.memory_space<vmem>>, vector<1x32xf32>
    %99 = vector.shape_cast %98 : vector<1x32xf32> to vector<1x1x32xf32>
    %100 = vector.broadcast %99 : vector<1x1x32xf32> to vector<2x8x32xf32>
    %101 = arith.addf %97, %100 : vector<2x8x32xf32>
    %102 = vector.shape_cast %101 : vector<2x8x32xf32> to vector<16x32xf32>
    %c0_28 = arith.constant 0 : index
    %c0_29 = arith.constant 0 : index
    %103 = vector.load %arg5[%c0_28, %c0_29] : memref<32x256xf32, #tpu.memory_space<vmem>>, vector<32x256xf32>
    %cst_30 = arith.constant dense<0.000000e+00> : vector<16x256xf32>
    %104 = tpu.matmul %102, %103, %cst_30 {dimension_numbers = #tpu.dot_dimension_numbers<[1], [0], [0], [1], [0, 0, 1, 1], [], []>} : vector<16x32xf32>, vector<32x256xf32>, vector<16x256xf32> -> vector<16x256xf32>
    %c0_31 = arith.constant 0 : index
    %c0_32 = arith.constant 0 : index
    %105 = vector.load %arg6[%c0_31, %c0_32] : memref<1x256xf32, #tpu.memory_space<vmem>>, vector<1x256xf32>
    %106 = vector.broadcast %105 : vector<1x256xf32> to vector<16x256xf32>
    %107 = arith.addf %104, %106 : vector<16x256xf32>
    %108 = math.tanh %107 : vector<16x256xf32>
    %109 = vector.shape_cast %108 : vector<16x256xf32> to vector<2x8x256xf32>
    %c0_33 = arith.constant 0 : index
    %c0_34 = arith.constant 0 : index
    %110 = vector.load %arg7[%c0_33, %c0_34] : memref<1x256xf32, #tpu.memory_space<vmem>>, vector<1x256xf32>
    %111 = vector.shape_cast %110 : vector<1x256xf32> to vector<1x1x256xf32>
    %112 = vector.broadcast %111 : vector<1x1x256xf32> to vector<2x8x256xf32>
    %113 = arith.mulf %109, %112 : vector<2x8x256xf32>
    %cst_35 = arith.constant dense<0.000000e+00> : vector<2x8xf32>
    %114 = vector.multi_reduction <add>, %113, %cst_35 [2] : vector<2x8x256xf32> to vector<2x8xf32>
    %115 = arith.addf %114, %7 : vector<2x8xf32>
    %cst_36 = arith.constant dense<0xFF800000> : vector<2xf32>
    %116 = vector.multi_reduction <maximumf>, %115, %cst_36 [1] : vector<2x8xf32> to vector<2xf32>
    %117 = vector.shape_cast %116 : vector<2xf32> to vector<2x1xf32>
    %118 = vector.broadcast %117 : vector<2x1xf32> to vector<2x8xf32>
    %119 = arith.subf %115, %118 : vector<2x8xf32>
    %120 = math.exp %119 : vector<2x8xf32>
    %cst_37 = arith.constant dense<0.000000e+00> : vector<2xf32>
    %121 = vector.multi_reduction <add>, %120, %cst_37 [1] : vector<2x8xf32> to vector<2xf32>
    %122 = vector.shape_cast %121 : vector<2xf32> to vector<2x1xf32>
    %123 = tpu.reciprocal %122 {approx = true} : vector<2x1xf32> -> vector<2x1xf32>
    %124 = vector.broadcast %123 : vector<2x1xf32> to vector<2x8xf32>
    %125 = arith.mulf %120, %124 : vector<2x8xf32>
    %126 = vector.shape_cast %125 : vector<2x8xf32> to vector<2x8x1xf32>
    %127 = vector.broadcast %126 : vector<2x8x1xf32> to vector<2x8x32xf32>
    %128 = arith.mulf %127, %101 : vector<2x8x32xf32>
    %cst_38 = arith.constant dense<0.000000e+00> : vector<2x32xf32>
    %129 = vector.multi_reduction <add>, %128, %cst_38 [1] : vector<2x8x32xf32> to vector<2x32xf32>
    %c0_39 = arith.constant 0 : index
    %c0_40 = arith.constant 0 : index
    %130 = vector.load %arg8[%c0_39, %c0_40] : memref<2x32xf32, #tpu.memory_space<vmem>>, vector<2x32xf32>
    tpu.vector_store %arg8[%c0_39, %c0_40], %129 {strides = array<i32>} : memref<2x32xf32, #tpu.memory_space<vmem>>, vector<2x32xf32>,
    return
  }
  func.func @transform_0(%arg0: i32) -> (i32, i32, i32) {
    %c0_i32 = arith.constant 0 : i32
    %c0_i32_0 = arith.constant 0 : i32
    %c0_i32_1 = arith.constant 0 : i32
    return %arg0, %c0_i32, %c0_i32_0 : i32, i32, i32
  }
  func.func @transform_1(%arg0: i32) -> (i32, i32) {
    %c0_i32 = arith.constant 0 : i32
    %c0_i32_0 = arith.constant 0 : i32
    %c0_i32_1 = arith.constant 0 : i32
    return %c0_i32, %c0_i32_0 : i32, i32
  }
  func.func @transform_2(%arg0: i32) -> (i32, i32) {
    %c0_i32 = arith.constant 0 : i32
    %c0_i32_0 = arith.constant 0 : i32
    %c0_i32_1 = arith.constant 0 : i32
    return %c0_i32, %c0_i32_0 : i32, i32
  }
  func.func @transform_3(%arg0: i32) -> (i32, i32) {
    %c0_i32 = arith.constant 0 : i32
    %c0_i32_0 = arith.constant 0 : i32
    %c0_i32_1 = arith.constant 0 : i32
    return %c0_i32, %c0_i32_0 : i32, i32
  }
  func.func @transform_4(%arg0: i32) -> (i32, i32) {
    %c0_i32 = arith.constant 0 : i32
    %c0_i32_0 = arith.constant 0 : i32
    %c0_i32_1 = arith.constant 0 : i32
    return %c0_i32, %c0_i32_0 : i32, i32
  }
  func.func @transform_5(%arg0: i32) -> (i32, i32) {
    %c0_i32 = arith.constant 0 : i32
    %c0_i32_0 = arith.constant 0 : i32
    %c0_i32_1 = arith.constant 0 : i32
    return %c0_i32, %c0_i32_0 : i32, i32
  }
  func.func @transform_6(%arg0: i32) -> (i32, i32) {
    %c0_i32 = arith.constant 0 : i32
    %c0_i32_0 = arith.constant 0 : i32
    %c0_i32_1 = arith.constant 0 : i32
    return %c0_i32, %c0_i32_0 : i32, i32
  }
  func.func @transform_7(%arg0: i32) -> (i32, i32) {
    %c0_i32 = arith.constant 0 : i32
    %c0_i32_0 = arith.constant 0 : i32
    return %arg0, %c0_i32 : i32, i32
  }
}

</mosaic_0001>

<bundles_post_ra>
// kernel: tpu_custom_call.1
= control target key start
LH: loop header
LB: loop body
LE: loop exit
PB: predicated region body
PF: predicated region fallthrough
CT: control target
= control target key end

     0   :  { %12 = vsyncpa [#allocation3], 0  ;;  %s2456_s0 = inlined_call_operand.hbm [shape: bf16[2,8,32], index: 0, kind: input, shape index: {}]   ;;  %s2457_s1 = inlined_call_operand.hbm [shape: f32[32,192], index: 1, kind: input, shape index: {}]   ;;  %s2458_s2 = inlined_call_operand.vmem [shape: f32[1,192], index: 2, kind: input, shape index: {}]   ;;  %s2459_s3 = inlined_call_operand.vmem [shape: f32[1,32], index: 3, kind: input, shape index: {}]   ;;  %s2460_s4 = inlined_call_operand.hbm [shape: f32[32,256], index: 4, kind: input, shape index: {}]   ;;  %s2461_s5 = inlined_call_operand.vmem [shape: f32[1,256], index: 5, kind: input, shape index: {}]   ;;  %s2462_s6 = inlined_call_operand.vmem [shape: f32[1,256], index: 6, kind: input, shape index: {}]   ;;  %s2463_s7 = inlined_call_operand.hbm [shape: f32[2,32], index: 7, kind: output, shape index: {}]  }
   0x1   :  { %13 = vsyncpa [#allocation6], 0 }
   0x2   :  { %14 = vsyncpa [#allocation4], 0  ;;  %s2116_s24 = smov [#allocation5]   ;;  %s2022_s28 = scalar_lea.hbm %s2457_s1, 1024 }
   0x3   :  { %s32_s25 = sshll.u32 %s2116_s24, 4  ;;  %p2023_p0 = scmp.ne.s32.totalorder %s2457_s1, %s2022_s28  ;;  %s33_s25 = int_to_ptr.vmem [resolvable:$true] %s32_s25 }
   0x4   :  { %p2026_p1 = scmp.lt.u32.totalorder %s2022_s28, %s2457_s1 }
   0x6   :  { %p2028_p2 = pnand %p2026_p1, %p2023_p0 }
   0x8   :  { %2031 = shalt.err (!%p2028_p2)
}
   0x9   :  { %s2032_s10 = scalar_lea.vmem %s33_s25, 1024  ;;  %p2037_p4 = scmp.lt.s32.totalorder %s33_s25, %s33_s25 }
   0xa   :  { %p2033_p3 = scmp.ne.s32.totalorder %s33_s25, %s2032_s10  ;;  %p2038_p5 = scmp.lt.s32.totalorder %s2032_s10, %s2032_s10 }
   0xc   :  { %p2039_p6 = por %p2038_p5, %p2037_p4 }
   0xe   :  { %p2040_p7 = pnand %p2039_p6, %p2033_p3 }
  0x10   :  { %2043 = shalt.err (!%p2040_p7)
}
  0x11   :  { %s2117_s11 = smov 256   ;;  %s2118_s12 = smov 16  }
  0x12   :  { %38 = dma.hbm_to_vmem [thread:$0]  %s2457_s1, 1024, %s33_s25, [#allocation6], %s2117_s11, %s2117_s11, %s2118_s12  }
  0x13   :  { %s2119_s15 = smov [#allocation2]   ;;  %s2044_s19 = scalar_lea.hbm %s2456_s0, 128 }
  0x14   :  { %s20_s16 = sshll.u32 %s2119_s15, 4  ;;  %p2045_p8 = scmp.ne.s32.totalorder %s2456_s0, %s2044_s19  ;;  %s21_s16 = int_to_ptr.vmem [resolvable:$true] %s20_s16 }
  0x15   :  { %p2048_p9 = scmp.lt.u32.totalorder %s2044_s19, %s2456_s0 }
  0x17   :  { %p2050_p10 = pnand %p2048_p9, %p2045_p8 }
  0x19   :  { %2053 = shalt.err (!%p2050_p10)
}
  0x1a   :  { %s2054_s24 = scalar_lea.vmem %s21_s16, 128  ;;  %p2059_p12 = scmp.lt.s32.totalorder %s21_s16, %s21_s16 }
  0x1b   :  { %p2055_p11 = scmp.ne.s32.totalorder %s21_s16, %s2054_s24  ;;  %p2060_p13 = scmp.lt.s32.totalorder %s2054_s24, %s2054_s24 }
  0x1d   :  { %p2061_p0 = por %p2060_p13, %p2059_p12 }
  0x1f   :  { %p2062_p1 = pnand %p2061_p0, %p2055_p11 }
  0x21   :  { %2065 = shalt.err (!%p2062_p1)
}
  0x22   :  { %s2120_s1 = smov 64   ;;  %s2121_s25 = smov 4  }
  0x23   :  { %26 = dma.hbm_to_vmem [thread:$0]  %s2456_s0, 128, %s21_s16, [#allocation3], %s2120_s1, %s2120_s1, %s2121_s25  }
  0x24   :  { %s2122_s28 = smov [#allocation7]   ;;  %s2066_s9 = scalar_lea.hbm %s2460_s4, 1024 }
  0x25   :  { %s48_s29 = sshll.u32 %s2122_s28, 4  ;;  %p2067_p2 = scmp.ne.s32.totalorder %s2460_s4, %s2066_s9  ;;  %s49_s29 = int_to_ptr.vmem [resolvable:$true] %s48_s29 }
  0x26   :  { %p2070_p3 = scmp.lt.u32.totalorder %s2066_s9, %s2460_s4 }
  0x28   :  { %p2072_p4 = pnand %p2070_p3, %p2067_p2 }
  0x2a   :  { %2075 = shalt.err (!%p2072_p4)
}
  0x2b   :  { %s2076_s17 = scalar_lea.vmem %s49_s29, 1024  ;;  %p2081_p6 = scmp.lt.s32.totalorder %s49_s29, %s49_s29 }
  0x2c   :  { %p2077_p5 = scmp.ne.s32.totalorder %s49_s29, %s2076_s17  ;;  %p2082_p7 = scmp.lt.s32.totalorder %s2076_s17, %s2076_s17 }
  0x2e   :  { %p2083_p8 = por %p2082_p7, %p2081_p6 }
  0x30   :  { %p2084_p9 = pnand %p2083_p8, %p2077_p5 }
  0x32   :  { %2087 = shalt.err (!%p2084_p9)
}
  0x33   :  { %54 = dma.hbm_to_vmem [thread:$0]  %s2460_s4, 1024, %s49_s29, [#allocation6], %s2117_s11, %s2117_s11, %s2118_s12  }
  0x34   :  { %2110 = dma.done.wait [#allocation3], 128  }
  0x35   :  { %2111 = vsyncadd [#allocation3], 4294967168 }
  0x36   :  { %2112 = dma.done.wait [#allocation6], 2048  }
  0x37   :  { %2113 = vsyncadd [#allocation6], 4294965248  ;;  %v2123_v0 = vmov 0.0   ;;  %v84_v1 = vld [vmem:[#allocation5 + $0x8] sm:$0xff]  ;;  %v86_v2 = vld [vmem:[#allocation5 + $0x18] sm:$0xff]  ;;  %vm72_vm0 = vcmask 261120   ;;  %v93_v16 = vlaneseq }
  0x38   :  { %173 = vmatprep.mubr.f32.mxu0 %v2123_v0  ;;  %1864 = vmatprep.subr.mxu1 %v2123_v0  ;;  %v83_v3 = vld [vmem:[#allocation5] sm:$0xff]  ;;  %v1939_v4 = vpack.c.bf16 %v86_v2, %v84_v1  ;;  %v85_v5 = vld [vmem:[#allocation5 + $0x10] sm:$0xff]  ;;  %v88_v6 = vld [vmem:[#allocation5 + $0x28] sm:$0xff]  ;;  %vm2124_vm1 = vmmov 0   ;;  %s2125_s12 = smov 88   ;;  %s2127_s18 = smov 120  }
  0x39   :  { %v90_v7 = vld [vmem:[#allocation5 + $0x38] sm:$0xff]  ;;  %v1941_v8 = vpack.c.bf16 %v85_v5, %v83_v3  ;;  %v87_v10 = vld [vmem:[#allocation5 + $0x20] sm:$0xff]  ;;  %v89_v11 = vld [vmem:[#allocation5 + $0x30] sm:$0xff]  ;;  %v2225_v17 = vshrl.u32 %v93_v16, 7  ;;  %1866 = vmatprep.mubr.msk.f32.mxu1 %vm2124_vm1, %v2123_v0  ;;  %vm210_vm2 = vcmask 64512   ;;  %v191_v36 = vand.u32 127, %v93_v16 }
  0x3a   :  { %v1943_v9 = vpack.c.bf16 %v90_v7, %v88_v6  ;;  %1940 = vmatprep.subr.bf16.mxu0 %v1939_v4  ;;  %v1945_v12 = vpack.c.bf16 %v89_v11, %v87_v10  ;;  %v1824_v13 = vld [vmem:[#allocation2] sm:$0xff]   ;;  %s2128_s19 = smov 32   ;;  %s2129_s20 = smov 112   ;;  %vm196_vm5 = vcmask 1041409   ;;  %vm1690_vm6 = vcmask 58368  }
  0x3b   :  { %1942 = vmatpush1.bf16.msra.mxu0 %v1941_v8  ;;  %v1825_v14 = vunpack.c.l.bf16 %v1824_v13  ;;  %v1826_v15 = vunpack.c.h.bf16 %v1824_v13  ;;  %v2228_v18 = vsub.s32 0, %v2225_v17  ;;  %v2233_v19 = vld [vmem:[%s2458_s2] sm:$0x3]  ;;  %s2126_s2 = smov 96   ;;  %v2285_v39 = vsub.s32 %v191_v36, %v2225_v17  ;;  %s2130_s21 = smov 80  }
  0x3c   :  { %1944 = vmatprep.subr.bf16.mxu0 %v1943_v9  ;;  %s2131_s22 = smov 72   ;;  %s2132_s23 = smov 104   ;;  %vm1776_vm7 = vcmask 254976  }
  0x3d   :  { %v96_v20 = vrot.slane %v2233_v19, %v2228_v18  ;;  %v73_v27 = vsel %vm72_vm0, %v1825_v14, 0.0  ;;  %v76_v28 = vsel %vm72_vm0, %v1826_v15, 0.0 }
  0x3f   :  { %1946 = vmatpush1.bf16.msra.mxu0 %v1945_v12 }
  0x40   :  { %1859 = vmatprep.subr.mxu0 %v2123_v0 }
  0x42   :  { %1794 = vmatmul.mubr.msk.f32.vlgmr.msra.gmra.mrb[0].mxu0 %vm72_vm0, %v1825_v14 }
  0x43   :  { %179 = vmatprep.mubr.f32.mxu0 %v2123_v0 }
  0x46   :  { %1795 = vmatmul.mubr.msk.f32.gmra.mrb[2].mxu0 %vm72_vm0, %v1826_v15 }
  0x47   :  { %1861 = vmatprep.mubr.msk.f32.mxu0 %vm2124_vm1, %v2123_v0 }
 0x115   :  { %v175_v21 = vpop.f32.mrb[0].mxu0 }
 0x116   :  { %v2241_v22 = vadd.f32 %v175_v21, %v96_v20  ;;  %v2243_v23 = vpop.f32.mrb[1].mxu0 }
 0x118   :  { %398 = vrot.lane.b32.xlu1 %v2241_v22, %s2125_s12 }
 0x119   :  { %v181_v24 = vpop.f32.mrb[2].mxu0 }
 0x11a   :  { %v2246_v25 = vadd.f32 %v181_v24, %v96_v20  ;;  %v2248_v26 = vpop.f32.mrb[3].mxu0 }
 0x11c   :  { %286 = vrot.lane.b32.xlu0 %v2246_v25, %s2126_s2  ;;  %396 = vrot.lane.b32.xlu1 %v2241_v22, %s2127_s18 }
 0x120   :  { %474 = vrot.lane.b32.xlu1 %v2246_v25, %s2127_s18  ;;  %187 = vrot.lane.b32.xlu0 %v2241_v22, %s2126_s2 }
 0x124   :  { %476 = vrot.lane.b32.xlu0 %v2246_v25, %s2125_s12 }
 0x143   :  { %74 = vadd.xlane.f32.xlu0 %v73_v27 }
 0x144   :  { %77 = vadd.xlane.f32.xlu1 %v76_v28 }
 0x18a   :  { %v399_v29 = vpop.permute.xlu1 %398 }
 0x18e   :  { %v287_v30 = vpop.permute.xlu0 %286  ;;  %v397_v32 = vpop.permute.xlu1 %396 }
 0x18f   :  { %1865 = vmatpush3.xpose.msk.msra.mxu1 %vm210_vm2, %v287_v30 }
 0x190   :  { %1869 = vmatprep.subr.mxu1 %v2123_v0 }
 0x192   :  { %1867 = vmatmul.mubr.msk.f32.vlgmr.msra.gmra.mrb[0].mxu1 %vm210_vm2, %v2246_v25  ;;  %v188_v31 = vpop.permute.xlu0 %187  ;;  %v475_v34 = vpop.permute.xlu1 %474 }
 0x193   :  { %1860 = vmatpush3.xpose.msk.msra.mxu0 %vm210_vm2, %v188_v31  ;;  %1870 = vmatpush3.xpose.msk.msra.mxu1 %vm210_vm2, %v399_v29 }
 0x194   :  { %1871 = vmatprep.mubr.msk.f32.mxu1 %vm2124_vm1, %v2123_v0  ;;  %1874 = vmatprep.subr.mxu0 %v2123_v0 }
 0x195   :  { %1879 = vmatprep.subr.mxu1 %v2123_v0 }
 0x196   :  { %1862 = vmatmul.mubr.msk.f32.vlgmr.msra.gmra.mrb[4].mxu0 %vm210_vm2, %v2241_v22  ;;  %1872 = vmatmul.mubr.msk.f32.vlgmr.msra.gmra.mrb[2].mxu1 %vm210_vm2, %v397_v32  ;;  %v477_v33 = vpop.permute.xlu0 %476 }
 0x197   :  { %1875 = vmatpush3.xpose.msk.msra.mxu0 %vm210_vm2, %v477_v33  ;;  %1876 = vmatprep.mubr.msk.f32.mxu0 %vm2124_vm1, %v2123_v0 }
 0x198   :  { %1884 = vmatprep.subr.mxu0 %v2123_v0  ;;  %1881 = vmatprep.mubr.msk.f32.mxu1 %vm2124_vm1, %v2123_v0 }
 0x19a   :  { %1877 = vmatmul.mubr.msk.f32.vlgmr.msra.gmra.mrb[6].mxu0 %vm210_vm2, %v475_v34 }
 0x19b   :  { %1886 = vmatprep.mubr.msk.f32.mxu0 %vm2124_vm1, %v2123_v0 }
 0x1d0   :  { %v75_v35 = vpop.xlane.xlu0 %74 }
 0x1d1   :  { %vm79_vm3 = vcmp.eq.f32.partialorder %v75_v35, 0.0  ;;  %v78_v37 = vpop.xlane.xlu1 %77 }
 0x1d2   :  { %v2282_v38 = vsel %vm79_vm3, -1e+30, %v2123_v0  ;;  %vm80_vm4 = vcmp.eq.f32.partialorder %v78_v37, 0.0 }
 0x1d3   :  { %v2289_v41 = vrot.slane %v2282_v38, %v2285_v39  ;;  %v2292_v43 = vsel %vm80_vm4, -1e+30, %v2123_v0 }
 0x1d4   :  { %v2298_v50 = vrot.slane %v2292_v43, %v2285_v39 }
 0x265   :  { %v370_v40 = vpop.f32.mrb[0].mxu1 }
 0x266   :  { %v1868_v42 = vpop.f32.mrb[1].mxu1  ;;  %v371_v56 = vadd.f32 %v370_v40, %v2298_v50 }
 0x267   :  { %v2327_v42 = vsub.s32 1, %v2225_v17 }
 0x268   :  { %v377_v58 = vsel %vm210_vm2, %v371_v56, -inf }
 0x269   :  { %v281_v44 = vpop.f32.mrb[4].mxu0  ;;  %v470_v45 = vpop.f32.mrb[2].mxu1  ;;  %v100_v17 = vrot.slane %v2233_v19, %v2327_v42 }
 0x26a   :  { %v282_v46 = vadd.f32 %v281_v44, %v2289_v41  ;;  %v471_v47 = vadd.f32 %v470_v45, %v2289_v41  ;;  %v1863_v48 = vpop.f32.mrb[5].mxu0  ;;  %v1873_v49 = vpop.f32.mrb[3].mxu1 }
 0x26b   :  { %v2349_v49 = vadd.f32 %v2243_v23, %v100_v17 }
 0x26c   :  { %v552_v51 = vsel %vm210_vm2, %v471_v47, -inf  ;;  %v374_v52 = vsel %vm210_vm2, %v282_v46, -inf }
 0x26d   :  { %v548_v53 = vpop.f32.mrb[6].mxu0  ;;  %553 = vmax.xlane.f32.xlu0 %v552_v51  ;;  %375 = vmax.xlane.f32.xlu1 %v374_v52 }
 0x26e   :  { %v549_v54 = vadd.f32 %v548_v53, %v2298_v50  ;;  %v1878_v55 = vpop.f32.mrb[7].mxu0 }
 0x270   :  { %v555_v57 = vsel %vm210_vm2, %v549_v54, -inf }
 0x271   :  { %556 = vmax.xlane.f32.xlu0 %v555_v57 }
 0x275   :  { %378 = vmax.xlane.f32.xlu0 %v377_v58 }
 0x27e   :  { %574 = vrot.lane.b32.xlu1 %v2241_v22, %s2128_s19 }
 0x282   :  { %650 = vrot.lane.b32.xlu1 %v2246_v25, %s2128_s19 }
 0x28b   :  { %726 = vrot.lane.b32.xlu0 %v2241_v22, %s2120_s1 }
 0x2fa   :  { %v554_v59 = vpop.xlane.xlu0 %553  ;;  %v376_v60 = vpop.xlane.xlu1 %375 }
 0x2fb   :  { %v558_v61 = vsub.f32 %v471_v47, %v554_v59  ;;  %v380_v62 = vsub.f32 %v282_v46, %v376_v60  ;;  %v2345_v47 = vadd.f32 %v2248_v26, %v100_v17 }
 0x2fd   :  { %v382_v63 = vmul.f32 1.442695, %v380_v62  ;;  %v560_v1 = vmul.f32 1.442695, %v558_v61 }
 0x2fe   :  { %v557_v2 = vpop.xlane.xlu0 %556  ;;  %v575_v3 = vpop.permute.xlu1 %574 }
 0x2ff   :  { %v559_v4 = vsub.f32 %v549_v54, %v557_v2  ;;  %1880 = vmatpush3.msra.mxu1 %v575_v3  ;;  %1976 = vpow2.f32 %v382_v63 }
 0x300   :  { %1889 = vmatprep.subr.mxu1 %v2123_v0  ;;  %1978 = vpow2.f32 %v560_v1 }
 0x301   :  { %v562_v5 = vmul.f32 1.442695, %v559_v4 }
 0x302   :  { %v379_v6 = vpop.xlane.xlu0 %378  ;;  %v651_v7 = vpop.permute.xlu1 %650 }
 0x303   :  { %1980 = vpow2.f32 %v562_v5  ;;  %v381_v8 = vsub.f32 %v371_v56, %v379_v6  ;;  %1885 = vmatpush3.msra.mxu0 %v651_v7 }
 0x304   :  { %1894 = vmatprep.subr.mxu0 %v2123_v0 }
 0x305   :  { %v384_v9 = vmul.f32 1.442695, %v381_v8 }
 0x306   :  { %v727_v21 = vpop.permute.xlu0 %726 }
 0x307   :  { %1982 = vpow2.f32 %v384_v9 }
 0x309   :  { %v1977_v10 = vpop.eup %1976 }
 0x30a   :  { %v386_v11 = vsel %vm210_vm2, %v1977_v10, 0.0  ;;  %v1979_v12 = vpop.eup %1978 }
 0x30b   :  { %387 = vadd.xlane.f32.xlu1 %v386_v11  ;;  %v564_v15 = vsel %vm210_vm2, %v1979_v12, 0.0 }
 0x30d   :  { %v1981_v13 = vpop.eup %1980 }
 0x30e   :  { %v567_v14 = vsel %vm210_vm2, %v1981_v13, 0.0 }
 0x30f   :  { %568 = vadd.xlane.f32.xlu0 %v567_v14  ;;  %565 = vadd.xlane.f32.xlu1 %v564_v15 }
 0x311   :  { %v1983_v16 = vpop.eup %1982 }
 0x312   :  { %v389_v20 = vsel %vm210_vm2, %v1983_v16, 0.0 }
 0x313   :  { %390 = vadd.xlane.f32.xlu0 %v389_v20 }
 0x320   :  { %802 = vrot.lane.b32.xlu1 %v2246_v25, %s2120_s1 }
 0x324   :  { %878 = vrot.lane.b32.xlu1 %v2241_v22, %s2129_s20 }
 0x328   :  { %956 = vrot.lane.b32.xlu1 %v2246_v25, %s2129_s20 }
 0x329   :  { %880 = vrot.lane.b32.xlu0 %v2241_v22, %s2130_s21 }
 0x32d   :  { %958 = vrot.lane.b32.xlu0 %v2246_v25, %s2130_s21 }
 0x398   :  { %v388_v24 = vpop.xlane.xlu1 %387 }
 0x39c   :  { %v569_v27 = vpop.xlane.xlu0 %568  ;;  %v566_v28 = vpop.xlane.xlu1 %565 }
 0x39d   :  { %1984 = vrcp.f32 %v569_v27 }
 0x39e   :  { %1986 = vrcp.f32 %v566_v28 }
 0x39f   :  { %1988 = vrcp.f32 %v388_v24 }
 0x3a0   :  { %v391_v29 = vpop.xlane.xlu0 %390  ;;  %v803_v33 = vpop.permute.xlu1 %802 }
 0x3a1   :  { %1990 = vrcp.f32 %v391_v29 }
 0x3a4   :  { %v881_v37 = vpop.permute.xlu0 %880  ;;  %v879_v45 = vpop.permute.xlu1 %878 }
 0x3a7   :  { %v1985_v30 = vpop.eup %1984 }
 0x3a8   :  { %v1987_v31 = vpop.eup %1986  ;;  %v573_v32 = vmul.f32 %v1985_v30, %v1981_v13  ;;  %v959_v46 = vpop.permute.xlu0 %958 }
 0x3a9   :  { %v572_v34 = vmul.f32 %v1987_v31, %v1979_v12  ;;  %v1989_v35 = vpop.eup %1988  ;;  %v957_v48 = vpop.permute.xlu1 %956 }
 0x3aa   :  { %1887 = vmatmul.mubr.msk.f32.vlgmr.msra.gmra.mrb[8].mxu0 %vm210_vm2, %v573_v32  ;;  %v394_v44 = vmul.f32 %v1989_v35, %v1977_v10 }
 0x3ab   :  { %v1991_v36 = vpop.eup %1990  ;;  %1882 = vmatmul.mubr.msk.f32.vlgmr.msra.gmra.mrb[4].mxu1 %vm210_vm2, %v572_v34  ;;  %1895 = vmatpush3.msra.mxu0 %v803_v33 }
 0x3ac   :  { %v395_v40 = vmul.f32 %v1991_v36, %v1983_v16  ;;  %1890 = vmatpush3.msra.mxu1 %v727_v21  ;;  %1891 = vmatprep.mubr.msk.f32.mxu1 %vm2124_vm1, %v2123_v0 }
 0x3ad   :  { %1896 = vmatprep.mubr.msk.f32.mxu0 %vm2124_vm1, %v2123_v0  ;;  %1899 = vmatprep.subr.mxu1 %v2123_v0 }
 0x3ae   :  { %1897 = vmatmul.mubr.msk.f32.vlgmr.msra.gmra.mrb[10].mxu0 %vm210_vm2, %v395_v40  ;;  %1904 = vmatprep.subr.mxu0 %v2123_v0 }
 0x3af   :  { %1892 = vmatmul.mubr.msk.f32.vlgmr.msra.gmra.mrb[6].mxu1 %vm210_vm2, %v394_v44  ;;  %1906 = vmatprep.mubr.msk.f32.mxu0 %vm2124_vm1, %v2123_v0 }
 0x3b0   :  { %1901 = vmatprep.mubr.msk.f32.mxu1 %vm2124_vm1, %v2123_v0 }
 0x3b2   :  { %1905 = vmatpush3.xpose.msk.msra.mxu0 %vm210_vm2, %v959_v46 }
 0x3b3   :  { %1900 = vmatpush3.xpose.msk.msra.mxu1 %vm210_vm2, %v881_v37  ;;  %1914 = vmatprep.subr.mxu0 %v2123_v0 }
 0x3b4   :  { %1909 = vmatprep.subr.mxu1 %v2123_v0 }
 0x3b5   :  { %1907 = vmatmul.mubr.msk.f32.vlgmr.msra.gmra.mrb[12].mxu0 %vm210_vm2, %v957_v48 }
 0x3b6   :  { %1902 = vmatmul.mubr.msk.f32.vlgmr.msra.gmra.mrb[8].mxu1 %vm210_vm2, %v879_v45  ;;  %1915 = vmatpush3.msra.mxu0 %v2345_v47 }
 0x3b7   :  { %1910 = vmatpush3.msra.mxu1 %v2349_v49  ;;  %1916 = vmatprep.mubr.msk.f32.mxu0 %vm2124_vm1, %v2123_v0 }
 0x3b8   :  { %1924 = vmatprep.subr.mxu0 %v2123_v0  ;;  %1911 = vmatprep.mubr.msk.f32.mxu1 %vm2124_vm1, %v2123_v0 }
 0x3b9   :  { %1919 = vmatprep.subr.mxu1 %v2123_v0 }
 0x47d   :  { %v722_v19 = vpop.f32.mrb[8].mxu0 }
 0x47e   :  { %v646_v23 = vpop.f32.mrb[4].mxu1  ;;  %v1888_v26 = vpop.f32.mrb[9].mxu0 }
 0x47f   :  { %v1883_v51 = vpop.f32.mrb[5].mxu1 }
 0x481   :  { %v874_v52 = vpop.f32.mrb[10].mxu0 }
 0x482   :  { %v798_v53 = vpop.f32.mrb[6].mxu1  ;;  %v875_v54 = vadd.f32 %v874_v52, %v722_v19  ;;  %v1898_v55 = vpop.f32.mrb[11].mxu0 }
 0x483   :  { %v799_v56 = vadd.f32 %v798_v53, %v646_v23  ;;  %v1893_v57 = vpop.f32.mrb[7].mxu1 }
 0x488   :  { %v1030_v58 = vpop.f32.mrb[12].mxu0 }
 0x489   :  { %v952_v59 = vpop.f32.mrb[8].mxu1  ;;  %v1031_v60 = vadd.f32 %v1030_v58, %v2298_v50  ;;  %v1908_v61 = vpop.f32.mrb[13].mxu0 }
 0x48a   :  { %v953_v62 = vadd.f32 %v952_v59, %v2289_v41  ;;  %v1903_v63 = vpop.f32.mrb[9].mxu1  ;;  %v1548_v61 = vld [vmem:[#allocation7 + $0x8] sm:$0xff] }
 0x48b   :  { %v1037_v1 = vsel %vm210_vm2, %v1031_v60, -inf }
 0x48c   :  { %v1034_v2 = vsel %vm210_vm2, %v953_v62, -inf  ;;  %1038 = vmax.xlane.f32.xlu1 %v1037_v1  ;;  %v1549_v1 = vld [vmem:[#allocation7 + $0x10] sm:$0xff] }
 0x48d   :  { %1035 = vmax.xlane.f32.xlu0 %v1034_v2 }
 0x49d   :  { %1206 = vrot.lane.b32.xlu1 %v2241_v22, %s2131_s22 }
 0x4a1   :  { %1284 = vrot.lane.b32.xlu1 %v2246_v25, %s2131_s22 }
 0x4a5   :  { %1282 = vrot.lane.b32.xlu1 %v2246_v25, %s2132_s23 }
 0x519   :  { %v1039_v3 = vpop.xlane.xlu1 %1038 }
 0x51a   :  { %v1036_v4 = vpop.xlane.xlu0 %1035  ;;  %v1041_v5 = vsub.f32 %v1031_v60, %v1039_v3  ;;  %v1552_v3 = vld [vmem:[#allocation7 + $0x28] sm:$0xff] }
 0x51b   :  { %v1040_v6 = vsub.f32 %v953_v62, %v1036_v4  ;;  %v1550_v62 = vld [vmem:[#allocation7 + $0x18] sm:$0xff] }
 0x51c   :  { %v1044_v7 = vmul.f32 1.442695, %v1041_v5  ;;  %v1947_v63 = vpack.c.bf16 %v1550_v62, %v1548_v61  ;;  %v1554_v4 = vld [vmem:[#allocation7 + $0x38] sm:$0xff] }
 0x51d   :  { %v1042_v8 = vmul.f32 1.442695, %v1040_v6  ;;  %v1207_v14 = vpop.permute.xlu1 %1206  ;;  %v1951_v5 = vpack.c.bf16 %v1554_v4, %v1552_v3  ;;  %v1551_v6 = vld [vmem:[#allocation7 + $0x20] sm:$0xff] }
 0x51e   :  { %1992 = vpow2.f32 %v1044_v7  ;;  %v1553_v7 = vld [vmem:[#allocation7 + $0x30] sm:$0xff] }
 0x51f   :  { %1994 = vpow2.f32 %v1042_v8  ;;  %v1953_v8 = vpack.c.bf16 %v1553_v7, %v1551_v6 }
 0x521   :  { %v1285_v16 = vpop.permute.xlu1 %1284 }
 0x528   :  { %v1993_v9 = vpop.eup %1992 }
 0x529   :  { %v1049_v10 = vsel %vm210_vm2, %v1993_v9, 0.0  ;;  %v1995_v11 = vpop.eup %1994 }
 0x52a   :  { %1050 = vadd.xlane.f32.xlu0 %v1049_v10  ;;  %v1046_v12 = vsel %vm210_vm2, %v1995_v11, 0.0 }
 0x52e   :  { %1047 = vadd.xlane.f32.xlu0 %v1046_v12 }
 0x544   :  { %1204 = vrot.lane.b32.xlu0 %v2241_v22, %s2132_s23  ;;  %v1283_v22 = vpop.permute.xlu1 %1282 }
 0x5b7   :  { %v1051_v13 = vpop.xlane.xlu0 %1050 }
 0x5b8   :  { %1996 = vrcp.f32 %v1051_v13 }
 0x5bb   :  { %v1048_v25 = vpop.xlane.xlu0 %1047 }
 0x5bc   :  { %1998 = vrcp.f32 %v1048_v25 }
 0x5bf   :  { %v1205_v27 = vpop.permute.xlu0 %1204 }
 0x5c2   :  { %v1997_v15 = vpop.eup %1996 }
 0x5c3   :  { %v1055_v20 = vmul.f32 %v1997_v15, %v1993_v9 }
 0x5c5   :  { %1917 = vmatmul.mubr.msk.f32.vlgmr.msra.gmra.mrb[14].mxu0 %vm210_vm2, %v1055_v20  ;;  %v1555_v20 = vld [vmem:[%s2461_s5] sm:$0x3]  ;;  %s2134_s5 = smov [#allocation8]  }
 0x5c6   :  { %v1999_v21 = vpop.eup %1998  ;;  %1925 = vmatpush3.xpose.msk.msra.mxu0 %vm210_vm2, %v1285_v16  ;;  %1926 = vmatprep.mubr.msk.f32.mxu0 %vm2124_vm1, %v2123_v0 }
 0x5c7   :  { %v1054_v24 = vmul.f32 %v1999_v21, %v1995_v11  ;;  %1934 = vmatprep.subr.mxu0 %v2123_v0  ;;  %v1560_v21 = vrot.slane %v1555_v20, %v2228_v18 }
 0x5c9   :  { %1912 = vmatmul.mubr.msk.f32.vlgmr.msra.gmra.mrb[10].mxu1 %vm210_vm2, %v1054_v24  ;;  %1927 = vmatmul.mubr.msk.f32.vlgmr.msra.gmra.mrb[16].mxu0 %vm210_vm2, %v1283_v22  ;;  %v1564_v24 = vrot.slane %v1555_v20, %v2327_v42 }
 0x5ca   :  { %1920 = vmatpush3.xpose.msk.msra.mxu1 %vm210_vm2, %v1207_v14  ;;  %1921 = vmatprep.mubr.msk.f32.mxu1 %vm2124_vm1, %v2123_v0  ;;  %v1820_v14 = vld [vmem:[%s2459_s3] ss:$0 sm:$0xff] }
 0x5cb   :  { %1929 = vmatprep.subr.mxu1 %v2123_v0  ;;  %1936 = vmatprep.mubr.msk.f32.mxu0 %vm2124_vm1, %v2123_v0 }
 0x5cd   :  { %1922 = vmatmul.mubr.msk.f32.vlgmr.msra.gmra.mrb[12].mxu1 %vm210_vm2, %v1205_v27 }
 0x5ce   :  { %1931 = vmatprep.mubr.msk.f32.mxu1 %vm2124_vm1, %v2123_v0 }
 0x698   :  { %v1198_v28 = vpop.f32.mrb[14].mxu0 }
 0x699   :  { %v2387_v29 = vadd.f32 %v1198_v28, %v875_v54  ;;  %v1918_v30 = vpop.f32.mrb[15].mxu0 }
 0x69c   :  { %v1125_v31 = vpop.f32.mrb[10].mxu1  ;;  %v1356_v32 = vpop.f32.mrb[16].mxu0 }
 0x69d   :  { %v1202_v33 = vadd.f32 %v1125_v31, %v799_v56  ;;  %v1357_v34 = vadd.f32 %v1356_v32, %v2298_v50  ;;  %v1913_v35 = vpop.f32.mrb[11].mxu1  ;;  %v1928_v36 = vpop.f32.mrb[17].mxu0 }
 0x69f   :  { %v1363_v37 = vsel %vm210_vm2, %v1357_v34, -inf }
 0x6a0   :  { %v1278_v40 = vpop.f32.mrb[12].mxu1  ;;  %1364 = vmax.xlane.f32.xlu1 %v1363_v37 }
 0x6a1   :  { %v1279_v44 = vadd.f32 %v1278_v40, %v2289_v41  ;;  %v1923_v45 = vpop.f32.mrb[13].mxu1 }
 0x6a3   :  { %v1360_v17 = vsel %vm210_vm2, %v1279_v44, -inf }
 0x6a4   :  { %1361 = vmax.xlane.f32.xlu0 %v1360_v17 }
 0x6b1   :  { %1383 = vrot.lane.b32.xlu1 %v2349_v49, %s2126_s2 }
 0x72d   :  { %v1365_v46 = vpop.xlane.xlu1 %1364 }
 0x72e   :  { %v1367_v48 = vsub.f32 %v1357_v34, %v1365_v46 }
 0x730   :  { %v1370_v19 = vmul.f32 1.442695, %v1367_v48 }
 0x731   :  { %v1362_v23 = vpop.xlane.xlu0 %1361  ;;  %v1384_v50 = vpop.permute.xlu1 %1383 }
 0x732   :  { %2000 = vpow2.f32 %v1370_v19  ;;  %v1366_v26 = vsub.f32 %v1279_v44, %v1362_v23  ;;  %1930 = vmatpush3.msra.mxu1 %v1384_v50 }
 0x733   :  { %1948 = vmatprep.subr.bf16.mxu1 %v1947_v63 }
 0x734   :  { %v1368_v51 = vmul.f32 1.442695, %v1366_v26 }
 0x736   :  { %2002 = vpow2.f32 %v1368_v51 }
 0x73c   :  { %v2001_v52 = vpop.eup %2000 }
 0x73d   :  { %v1375_v41 = vsel %vm210_vm2, %v2001_v52, 0.0 }
 0x73e   :  { %1376 = vadd.xlane.f32.xlu0 %v1375_v41 }
 0x740   :  { %v2003_v53 = vpop.eup %2002 }
 0x741   :  { %v1372_v54 = vsel %vm210_vm2, %v2003_v53, 0.0 }
 0x742   :  { %1373 = vadd.xlane.f32.xlu0 %v1372_v54 }
 0x758   :  { %1460 = vrot.lane.b32.xlu0 %v2345_v47, %s2126_s2  ;;  %v1547_v47 = vld [vmem:[#allocation7] sm:$0xff] }
 0x759   :  { %v1949_v2 = vpack.c.bf16 %v1549_v1, %v1547_v47 }
 0x7cb   :  { %v1377_v49 = vpop.xlane.xlu0 %1376 }
 0x7cc   :  { %2004 = vrcp.f32 %v1377_v49 }
 0x7cf   :  { %v1374_v55 = vpop.xlane.xlu0 %1373 }
 0x7d0   :  { %2006 = vrcp.f32 %v1374_v55  ;;  %v2133_v55 = vmov 0  }
 0x7d1   :  { %1975 = vset.pattern.permute.xlu1 %v2133_v55  ;;  %1974 = vset.pattern.permute.xlu0 %v2133_v55 }
 0x7d3   :  { %v1461_v56 = vpop.permute.xlu0 %1460 }
 0x7d4   :  { %1935 = vmatpush3.msra.mxu0 %v1461_v56 }
 0x7d6   :  { %v2005_v57 = vpop.eup %2004 }
 0x7d7   :  { %v1381_v58 = vmul.f32 %v2005_v57, %v2001_v52 }
 0x7d9   :  { %1937 = vmatmul.mubr.msk.f32.vlgmr.msra.gmra.mrb[18].mxu0 %vm210_vm2, %v1381_v58 }
 0x7da   :  { %v2007_v59 = vpop.eup %2006 }
 0x7db   :  { %v1380_v60 = vmul.f32 %v2007_v59, %v2003_v53 }
 0x7dd   :  { %1932 = vmatmul.mubr.msk.f32.vlgmr.msra.gmra.mrb[14].mxu1 %vm210_vm2, %v1380_v60 }
 0x7de   :  { %1637 = vmatprep.mubr.f32.mxu1 %v2123_v0  ;;  %1950 = vmatpush1.bf16.msra.mxu1 %v1949_v2 }
 0x7df   :  { %1952 = vmatprep.subr.bf16.mxu1 %v1951_v5 }
 0x7e2   :  { %1954 = vmatpush1.bf16.msra.mxu1 %v1953_v8 }
 0x8ac   :  { %v1532_v9 = vpop.f32.mrb[18].mxu0 }
 0x8ad   :  { %v1537_v10 = vadd.f32 %v1532_v9, %v2387_v29  ;;  %v1938_v11 = vpop.f32.mrb[19].mxu0 }
 0x8af   :  { %v2411_v16 = vadd.f32 %v1820_v14, %v1537_v10 }
 0x8b0   :  { %v1455_v12 = vpop.f32.mrb[14].mxu1 }
 0x8b1   :  { %v1536_v13 = vadd.f32 %v1455_v12, %v1202_v33  ;;  %v1933_v25 = vpop.f32.mrb[15].mxu1  ;;  %v1654_v33 = vld [vmem:[%s2462_s6] sm:$0x3]  ;;  %s1784_s6 = sshll.u32 %s2134_s5, 4  ;;  %s1785_s6 = int_to_ptr.vmem [resolvable:$true] %s1784_s6 }
 0x8b2   :  { %v1659_v34 = vrot.slane %v1654_v33, %v2228_v18  ;;  %v1663_v35 = vrot.slane %v1654_v33, %v2327_v42  ;;  %s2088_s28 = scalar_lea.vmem %s1785_s6, 32  ;;  %p2093_p11 = scmp.lt.s32.totalorder %s1785_s6, %s1785_s6 }
 0x8b3   :  { %v2406_v15 = vadd.f32 %v1820_v14, %v1536_v13  ;;  %p2089_p10 = scmp.ne.s32.totalorder %s1785_s6, %s2088_s28  ;;  %p2094_p12 = scmp.lt.s32.totalorder %s2088_s28, %s2088_s28 }
 0x8b5   :  { %1821 = vmatmul.mubr.msk.f32.vlgmr.msra.gmra.mrb[16].mxu1 %vm72_vm0, %v2406_v15  ;;  %p2095_p13 = por %p2094_p12, %p2093_p11 }
 0x8b6   :  { %1643 = vmatprep.mubr.f32.mxu1 %v2123_v0 }
 0x8b7   :  { %p2096_p0 = pnand %p2095_p13, %p2089_p10 }
 0x8b9   :  { %1822 = vmatmul.mubr.msk.f32.gmra.mrb[18].mxu1 %vm72_vm0, %v2411_v16 }
 0x988   :  { %v1639_v22 = vpop.f32.mrb[16].mxu1 }
 0x989   :  { %v1640_v27 = vadd.f32 %v1639_v22, %v1560_v21  ;;  %v1641_v28 = vpop.f32.mrb[17].mxu1 }
 0x98a   :  { %v1642_v29 = vadd.f32 %v1641_v28, %v1564_v24 }
 0x98b   :  { %2008 = vtanh.f32 %v1640_v27 }
 0x98c   :  { %2010 = vtanh.f32 %v1642_v29  ;;  %v1645_v0 = vpop.f32.mrb[18].mxu1 }
 0x98d   :  { %v1646_v30 = vadd.f32 %v1645_v0, %v1560_v21  ;;  %v1647_v31 = vpop.f32.mrb[19].mxu1 }
 0x98e   :  { %v1648_v32 = vadd.f32 %v1647_v31, %v1564_v24 }
 0x98f   :  { %2012 = vtanh.f32 %v1646_v30 }
 0x990   :  { %2014 = vtanh.f32 %v1648_v32 }
 0x995   :  { %v2009_v36 = vpop.eup %2008 }
 0x996   :  { %v2011_v37 = vpop.eup %2010  ;;  %v1666_v40 = vmul.f32 %v2009_v36, %v1659_v34 }
 0x997   :  { %v1667_v44 = vmul.f32 %v2011_v37, %v1663_v35 }
 0x999   :  { %v2013_v45 = vpop.eup %2012  ;;  %v1670_v17 = vadd.f32 %v1667_v44, %v1666_v40 }
 0x99a   :  { %v2015_v46 = vpop.eup %2014  ;;  %v1668_v48 = vmul.f32 %v2013_v45, %v1659_v34 }
 0x99b   :  { %1671 = vadd.xlane.f32.xlu1 %v1670_v17  ;;  %v1669_v19 = vmul.f32 %v2015_v46, %v1663_v35 }
 0x99d   :  { %v1673_v23 = vadd.f32 %v1669_v19, %v1668_v48 }
 0x99f   :  { %1674 = vadd.xlane.f32.xlu0 %v1673_v23 }
 0xa28   :  { %v1672_v50 = vpop.xlane.xlu1 %1671 }
 0xa29   :  { %v1676_v26 = vadd.f32 %v1672_v50, %v2282_v38 }
 0xa2b   :  { %v1683_v41 = vrot.slane %v1676_v26, %v2285_v39 }
 0xa2c   :  { %v1675_v51 = vpop.xlane.xlu0 %1674 }
 0xa2d   :  { %v1677_v52 = vadd.f32 %v1675_v51, %v2292_v43 }
 0xa2f   :  { %v1687_v53 = vrot.slane %v1677_v52, %v2285_v39 }
 0xa31   :  { %v1688_v54 = vsel %vm196_vm5, %v1687_v53, %v1683_v41 }
 0xa32   :  { %v1691_v49 = vsel %vm1690_vm6, %v1688_v54, -inf }
 0xa33   :  { %1692 = vmax.xlane.f32.xlu1 %v1691_v49 }
 0xac0   :  { %v1693_v56 = vpop.xlane.xlu1 %1692 }
 0xac1   :  { %v1698_v38 = vrot.slane %v1693_v56, %v2228_v18  ;;  %v1702_v57 = vrot.slane %v1693_v56, %v2327_v42 }
 0xac3   :  { %v1705_v43 = vsub.f32 %v1676_v26, %v1698_v38  ;;  %v1706_v58 = vsub.f32 %v1677_v52, %v1702_v57 }
 0xac5   :  { %v1707_v59 = vmul.f32 1.442695, %v1705_v43  ;;  %v1709_v60 = vmul.f32 1.442695, %v1706_v58 }
 0xac7   :  { %2016 = vpow2.f32 %v1707_v59 }
 0xac8   :  { %2018 = vpow2.f32 %v1709_v60 }
 0xad1   :  { %v2017_v61 = vpop.eup %2016 }
 0xad2   :  { %v2019_v62 = vpop.eup %2018  ;;  %1714 = vperm.xlu0 %1974, %v2017_v61  }
 0xad3   :  { %1717 = vperm.xlu1 %1975, %v2019_v62  }
 0xb51   :  { %v1715_v63 = vpop.permute.xlu0 %1714 }
 0xb52   :  { %v1718_v47 = vpop.permute.xlu1 %1717  ;;  %v1722_v1 = vrot.slane %v1715_v63, %v2285_v39 }
 0xb53   :  { %v1726_v2 = vrot.slane %v1718_v47, %v2285_v39 }
 0xb55   :  { %v1727_v3 = vsel %vm196_vm5, %v1726_v2, %v1722_v1 }
 0xb56   :  { %v1729_v4 = vsel %vm1690_vm6, %v1727_v3, 0.0 }
 0xb57   :  { %1730 = vadd.xlane.f32.xlu1 %v1729_v4 }
 0xbe4   :  { %v1731_v5 = vpop.xlane.xlu1 %1730 }
 0xbe5   :  { %2020 = vrcp.f32 %v1731_v5 }
 0xbef   :  { %v2021_v6 = vpop.eup %2020 }
 0xbf0   :  { %v1737_v7 = vrot.slane %v2021_v6, %v2228_v18  ;;  %v1741_v9 = vrot.slane %v2021_v6, %v2327_v42 }
 0xbf2   :  { %v1744_v8 = vmul.f32 %v2017_v61, %v1737_v7  ;;  %v1745_v10 = vmul.f32 %v2019_v62, %v1741_v9 }
 0xbf4   :  { %1748 = vperm.xlu0 %1974, %v1744_v8  }
 0xbf8   :  { %1753 = vperm.xlu0 %1974, %v1745_v10  }
 0xc73   :  { %v1749_v11 = vpop.permute.xlu0 %1748 }
 0xc74   :  { %v1756_v12 = vmul.f32 %v1749_v11, %v2406_v15 }
 0xc76   :  { %v1758_v39 = vsel %vm72_vm0, %v1756_v12, 0.0 }
 0xc77   :  { %v1759_v13 = vrot.slane %v1758_v39, 4  ;;  %v1754_v25 = vpop.permute.xlu0 %1753 }
 0xc78   :  { %v1757_v14 = vmul.f32 %v1754_v25, %v2411_v16 }
 0xc79   :  { %v1760_v20 = vadd.f32 %v1759_v13, %v1758_v39 }
 0xc7a   :  { %v1765_v21 = vsel %vm72_vm0, %v1757_v14, 0.0 }
 0xc7b   :  { %v1761_v24 = vrot.slane %v1760_v20, 2  ;;  %v1766_v18 = vrot.slane %v1765_v21, 4 }
 0xc7d   :  { %v1762_v22 = vadd.f32 %v1761_v24, %v1760_v20  ;;  %v1767_v27 = vadd.f32 %v1766_v18, %v1765_v21 }
 0xc7f   :  { %v1768_v42 = vrot.slane %v1767_v27, 2  ;;  %v1763_v28 = vrot.slane %v1762_v22, 1 }
 0xc81   :  { %v1769_v29 = vadd.f32 %v1768_v42, %v1767_v27  ;;  %v1764_v15 = vadd.f32 %v1763_v28, %v1762_v22 }
 0xc83   :  { %v1770_v0 = vrot.slane %v1769_v29, 1 }
 0xc85   :  { %v1771_v30 = vadd.f32 %v1770_v0, %v1769_v29 }
 0xc87   :  { %v1774_v31 = vsel %vm196_vm5, %v1771_v30, %v1764_v15 }
 0xc88   :  { %1777 = vst.msk [vmem:[#allocation8] sm:$0x3] %vm1776_vm7, %v1774_v31 }
 0xc89   :  { %2099 = shalt.err (!%p2096_p0)
}
 0xc8a   :  { %s2100_s8 = scalar_lea.hbm %s2463_s7, 32 }
 0xc8b   :  { %p2101_p1 = scmp.ne.s32.totalorder %s2463_s7, %s2100_s8  ;;  %p2104_p2 = scmp.lt.u32.totalorder %s2100_s8, %s2463_s7 }
 0xc8d   :  { %p2106_p3 = pnand %p2104_p2, %p2101_p1 }
 0xc8f   :  { %2109 = shalt.err (!%p2106_p3)
}
 0xc90   :  { %1787 = dma.vmem_to_hbm [thread:$0]  %s1785_s6, 32, %s2463_s7, [#allocation4]  }
 0xc91   :  { %2114 = dma.done.wait [#allocation4], 32  }
 0xc92   :  { %2115 = vsyncadd [#allocation4], 4294967264 }
 0xc93   :  { %1791 = vsyncpa [#allocation3], 1 }
 0xc94   :  { %1792 = vsyncpa [#allocation6], 1 }
 0xc95   :  { %1793 = vsyncpa [#allocation4], 1 }

</bundles_post_ra>
